<compile_context>
chip_gen: v5e
topology: v5e:2x2
jax: 0.10.0
libtpu: 0.0.40
codegen_flags: <defaults>
</compile_context>

<pallas_src>
import functools

import jax
import jax.numpy as jnp
from jax.experimental import pallas as pl
from jax.experimental.pallas import tpu as pltpu


def _round_up(x, m):
    return ((x + m - 1) // m) * m


def _dice_kernel(p_ref, t_ref, num_ref, den_ref, *, kt, td, d_valid, p_pow,
                 needs_mask):
    """grid = (row_blocks, feature_splits, feature_tiles_per_split).

    num_ref / den_ref are lane-dense (rb, 128) partial-sum blocks, revisited
    (accumulated) across the innermost feature axis."""
    s = pl.program_id(1)
    k = pl.program_id(2)
    rb = num_ref.shape[0]
    n_chunks = td // 128

    @pl.when(k == 0)
    def _():
        num_ref[...] = jnp.zeros((rb, 128), jnp.float32)
        den_ref[...] = jnp.zeros((rb, 128), jnp.float32)

    def den_term(pc, tc):
        if p_pow == 2:
            return pc * pc + tc * tc
        if p_pow == 1:
            return pc + tc
        if isinstance(p_pow, int) and p_pow >= 1:
            pp, tp = pc, tc                     # repeated multiplies stay on the VALU
            for _ in range(p_pow - 1):
                pp = pp * pc
                tp = tp * tc
            return pp + tp
        # TODO(synk): generic non-integer p lowers to pow (EUP exp/log chain).
        return pc ** p_pow + tc ** p_pow

    def accumulate(masked):
        if masked:
            lane = jax.lax.broadcasted_iota(jnp.int32, (rb, 128), 1)
            base = (s * kt + k) * td            # global feature offset of this tile
        num_p = jnp.zeros((rb, 128), jnp.float32)
        den_p = jnp.zeros((rb, 128), jnp.float32)
        # Small static unroll over 128-lane ref slices: each chunk is loaded,
        # multiplied and folded immediately, so live ranges stay at a few vregs
        # (no full-width f32 num/den tiles).
        for c in range(n_chunks):
            pc = p_ref[:, c * 128:(c + 1) * 128].astype(jnp.float32)
            tc = t_ref[:, c * 128:(c + 1) * 128].astype(jnp.float32)
            if masked:
                ok = lane < (d_valid - base - c * 128)
                pc = jnp.where(ok, pc, 0.0)
                tc = jnp.where(ok, tc, 0.0)
            num_p = num_p + pc * tc
            den_p = den_p + den_term(pc, tc)
        num_ref[...] += num_p
        den_ref[...] += den_p

    if not needs_mask:
        accumulate(False)
    else:
        # Only the tile containing the ragged boundary pays for the mask; the
        # steady-state path is mask-free (matters once HBM stops being the
        # binding resource, e.g. v7x).
        tile_full = ((s * kt + k) + 1) * td <= d_valid

        @pl.when(tile_full)
        def _():
            accumulate(False)

        @pl.when(jnp.logical_not(tile_full))
        def _():
            accumulate(True)


def _pick_fold(n, d):
    """Fold factor S (features folded into rows): smallest S with D % S == 0
    and D/S >= 256 that reaches N*S >= 16 (two shardable row blocks); falls
    back to filling the 8 sublanes, else 1."""
    if n >= 16:
        return 1
    best = 1
    for s in range(2, 65):
        if d % s != 0 or d // s < 256:
            continue
        if n * s >= 16:
            return s
        if n < 8 and best == 1 and n * s >= 8:
            best = s
    return best


def _dice_rows_jnp(pred2d, targ2d, smooth, p):
    """Tiny-problem fallback: plain XLA beats a kernel launch."""
    pred = pred2d.astype(jnp.float32)
    targ = targ2d.astype(jnp.float32)
    num = jnp.sum(pred * targ, axis=1) + smooth
    if p == 2:
        den_t = pred * pred + targ * targ
    elif p == 1:
        den_t = pred + targ
    else:
        den_t = pred ** p + targ ** p
    den = jnp.sum(den_t, axis=1) + smooth
    return 1.0 - num / den


def _dice_rows_pallas(pred2d, targ2d, smooth, p, *, max_tile_d,
                      vmem_input_budget):
    n, d = pred2d.shape

    # Fold features into rows when N is small (fills sublanes, creates rows
    # for >= 2 "parallel" row blocks).
    s_fold = _pick_fold(n, d)
    dsub = d // s_fold
    r = n * s_fold
    if s_fold > 1:
        pred2d = pred2d.reshape(r, dsub)
        targ2d = targ2d.reshape(r, dsub)

    # Row block: a multiple of 8 (or the full row extent) and at least two
    # blocks when r >= 16 so the "parallel" row axis shards across cores.
    # Cap at 128 rows so the (rb, 128) accumulators stay register-friendly.
    if r < 16:
        rb = r
    else:
        rb = min(128, _round_up(pl.cdiv(r, 2), 8))
    n_row_blocks = pl.cdiv(r, rb)

    # Generation-aware VMEM budget (v5e/v6e: 128 MiB, v7x: 64 MiB per core).
    try:
        vmem_cap = int(pltpu.get_tpu_info().vmem_capacity_bytes)
    except Exception:  # conservative fallback, safe on all generations
        vmem_cap = 64 * 1024 * 1024
    vmem_limit = min(vmem_cap // 2, 96 * 1024 * 1024)
    if vmem_input_budget is None:
        vmem_input_budget = (vmem_limit * 3) // 4

    # Feature tile: biggest multiple of 128 whose double-buffered input
    # working set (2 arrays x 2 buffers) fits the budget.
    col_bytes = rb * (pred2d.dtype.itemsize + targ2d.dtype.itemsize) * 2
    td_budget = max(128, (vmem_input_budget // col_bytes) // 128 * 128)
    td = max(128, min(_round_up(dsub, 128), td_budget, max_tile_d))
    kt = pl.cdiv(dsub, td)
    n_splits = 1

    # If the rows alone cannot give two "parallel" blocks, split the feature
    # range into two halves (per-half partial sums, combined in the wrapper)
    # so both TensorCores stream on v7x.  Only if every tile still starts
    # in-bounds (no fully out-of-range DMA windows).
    if n_row_blocks == 1 and dsub >= 1024:
        kt2 = pl.cdiv(kt, 2)
        td2 = max(128, _round_up(pl.cdiv(dsub, 2 * kt2), 128))
        if (2 * kt2 - 1) * td2 < dsub and 2 * kt2 * td2 >= dsub and td2 <= td:
            n_splits, kt, td = 2, kt2, td2

    needs_mask = (n_splits * kt * td) != dsub

    kernel = functools.partial(_dice_kernel, kt=kt, td=td, d_valid=dsub,
                               p_pow=p, needs_mask=needs_mask)

    num_out, den_out = pl.pallas_call(
        kernel,
        out_shape=(jax.ShapeDtypeStruct((n_splits, r, 128), jnp.float32),
                   jax.ShapeDtypeStruct((n_splits, r, 128), jnp.float32)),
        grid_spec=pltpu.PrefetchScalarGridSpec(
            num_scalar_prefetch=0,
            grid=(n_row_blocks, n_splits, kt),
            in_specs=[
                pl.BlockSpec((rb, td), lambda i, s, k: (i, s * kt + k)),
                pl.BlockSpec((rb, td), lambda i, s, k: (i, s * kt + k)),
            ],
            out_specs=[
                pl.BlockSpec((None, rb, 128), lambda i, s, k: (s, i, 0)),
                pl.BlockSpec((None, rb, 128), lambda i, s, k: (s, i, 0)),
            ],
        ),
        compiler_params=pltpu.CompilerParams(
            dimension_semantics=("parallel", "parallel", "arbitrary"),
            vmem_limit_bytes=vmem_limit,
        ),
    )(pred2d, targ2d)

    # Cheap finals in the wrapper: cross-lane + split-half + fold reduction.
    num = num_out.sum(axis=(0, 2)).reshape(n, s_fold).sum(axis=1) + smooth
    den = den_out.sum(axis=(0, 2)).reshape(n, s_fold).sum(axis=1) + smooth
    return 1.0 - num / den


def binary_dice_loss(predict, target, *, smooth=1.0, p=2, reduction="mean",
                     max_tile_d=8192, vmem_input_budget=None,
                     min_elems_for_pallas=16384):
    """Pallas implementation of BinaryDiceLoss.forward."""
    assert predict.shape[0] == target.shape[0], \
        "predict & target batch size don't match"
    n = predict.shape[0]
    pred2d = predict.reshape(n, -1)
    targ2d = target.reshape(n, -1)
    d = pred2d.shape[1]

    # Stream the original (narrow) dtype; only normalize bool.
    if pred2d.dtype == jnp.bool_:
        pred2d = pred2d.astype(jnp.float32)
    if targ2d.dtype == jnp.bool_:
        targ2d = targ2d.astype(jnp.float32)

    smooth = float(smooth)
    if n * d < min_elems_for_pallas or d < 128:
        loss = _dice_rows_jnp(pred2d, targ2d, smooth, p)
    else:
        loss = _dice_rows_pallas(pred2d, targ2d, smooth, p,
                                 max_tile_d=max_tile_d,
                                 vmem_input_budget=vmem_input_budget)

    if reduction == "mean":
        return jnp.mean(loss)
    elif reduction == "sum":
        return jnp.sum(loss)
    elif reduction == "none":
        return loss
    else:
        raise Exception("Unexpected reduction {}".format(reduction))


def _reference(predict, target, smooth=1.0, p=2, reduction="mean"):
    n = predict.shape[0]
    pred = predict.reshape(n, -1).astype(jnp.float32)
    targ = target.reshape(n, -1).astype(jnp.float32)
    num = jnp.sum(pred * targ, axis=1) + smooth
    den = jnp.sum(pred ** p + targ ** p, axis=1) + smooth
    loss = 1.0 - num / den
    if reduction == "mean":
        return loss.mean()
    if reduction == "sum":
        return loss.sum()
    return loss


if __name__ == "__main__":
    key = jax.random.PRNGKey(0)
    keys = jax.random.split(key, 8)

    # Case 1: small NCHW input (sigmoid probabilities vs binary mask).
    predict = jax.nn.sigmoid(jax.random.normal(keys[0], (2, 4, 16, 16), jnp.float32))
    target = (jax.random.uniform(keys[1], (2, 4, 16, 16)) > 0.5).astype(jnp.float32)

    # 1a: default path (tiny input -> jnp fallback).
    out = jax.block_until_ready(binary_dice_loss(predict, target))
    ref = _reference(predict, target, 1.0, 2, "mean")
    assert jnp.allclose(out, ref, rtol=1e-5, atol=1e-5), (out, ref)

    # 1b: force the Pallas kernel, all reductions.
    for reduction in ("mean", "sum", "none"):
        out = binary_dice_loss(predict, target, smooth=1.0, p=2,
                               reduction=reduction, min_elems_for_pallas=0)
        out = jax.block_until_ready(out)
        ref = _reference(predict, target, 1.0, 2, reduction)
        assert jnp.allclose(out, ref, rtol=1e-5, atol=1e-5), (reduction, out, ref)

    # 1c: integer p != 2 exercises the repeated-multiply denominator path.
    out = jax.block_until_ready(
        binary_dice_loss(predict, target, smooth=1.0, p=3, reduction="none",
                         min_elems_for_pallas=0))
    ref = _reference(predict, target, 1.0, 3, "none")
    assert jnp.allclose(out, ref, rtol=1e-5, atol=1e-5), (out, ref)

    # Case 2: ragged feature width (D = 8*30*30 = 7200): sublane fold, two
    # row blocks, in-kernel tail masking only on the boundary tile.
    predict2 = jax.nn.sigmoid(jax.random.normal(keys[2], (3, 8, 30, 30), jnp.float32))
    target2 = (jax.random.uniform(keys[3], (3, 8, 30, 30)) > 0.5).astype(jnp.float32)
    out2 = jax.block_until_ready(
        binary_dice_loss(predict2, target2, smooth=1.0, p=2, reduction="none"))
    ref2 = _reference(predict2, target2, 1.0, 2, "none")
    assert jnp.allclose(out2, ref2, rtol=1e-5, atol=1e-5), (out2, ref2)

    # Case 3: multi-tile feature grid (small max_tile_d): exercises the
    # zero-init / accumulate path across feature tiles with 2 row blocks.
    predict3 = jax.nn.sigmoid(jax.random.normal(keys[4], (2, 8, 64, 64), jnp.float32))
    target3 = (jax.random.uniform(keys[5], (2, 8, 64, 64)) > 0.5).astype(jnp.float32)
    out3 = jax.block_until_ready(
        binary_dice_loss(predict3, target3, smooth=1.0, p=2, reduction="mean",
                         max_tile_d=1024))
    ref3 = _reference(predict3, target3, 1.0, 2, "mean")
    assert jnp.allclose(out3, ref3, rtol=1e-5, atol=1e-5), (out3, ref3)

    # Case 4: N=1 with a prime-ish feature count (D = 67*67): rows cannot be
    # folded to 16, so the feature range splits into two "parallel" halves
    # with per-half partial sums (the 2-TensorCore path on v7x).
    predict4 = jax.nn.sigmoid(jax.random.normal(keys[6], (1, 1, 67, 67), jnp.float32))
    target4 = (jax.random.uniform(keys[7], (1, 1, 67, 67)) > 0.5).astype(jnp.float32)
    out4 = jax.block_until_ready(
        binary_dice_loss(predict4, target4, smooth=1.0, p=2, reduction="none",
                         min_elems_for_pallas=0))
    ref4 = _reference(predict4, target4, 1.0, 2, "none")
    assert jnp.allclose(out4, ref4, rtol=1e-5, atol=1e-5), (out4, ref4)

    print("KERNEL_OK")
</pallas_src>

<mosaic_0001>
module attributes {stable_mosaic.version = 11 : i64} {
  func.func @_dice_kernel(%arg0: i32, %arg1: i32, %arg2: i32, %arg3: memref<8x256xf32, #tpu.memory_space<vmem>>, %arg4: memref<8x256xf32, #tpu.memory_space<vmem>>, %arg5: memref<1x8x128xf32, #tpu.memory_space<vmem>>, %arg6: memref<1x8x128xf32, #tpu.memory_space<vmem>>) attributes {dimension_semantics = [#tpu.dimension_semantics<parallel>, #tpu.dimension_semantics<parallel>, #tpu.dimension_semantics<arbitrary>], iteration_bounds = array<i64: 1, 1, 1>, scalar_prefetch = 0 : i64, scratch_operands = 0 : i64, tpu.core_type = #tpu.core_type<tc>, window_params = [{transform_indices = @transform_0, window_bounds = array<i64: 8, 256>}, {transform_indices = @transform_1, window_bounds = array<i64: 8, 256>}, {transform_indices = @transform_2, window_bounds = array<i64: 1, 8, 128>}, {transform_indices = @transform_3, window_bounds = array<i64: 1, 8, 128>}]} {
    %c0_i32 = arith.constant 0 : i32
    %0 = arith.cmpi eq, %arg2, %c0_i32 : i32
    %1 = arith.extui %0 : i1 to i32
    %c0_i32_0 = arith.constant 0 : i32
    %2 = arith.cmpi ne, %1, %c0_i32_0 : i32
    scf.if %2 {
      %cst_20 = arith.constant 0.000000e+00 : f32
      %33 = vector.broadcast %cst_20 : f32 to vector<8x128xf32>
      %c0_21 = arith.constant 0 : index
      %c0_22 = arith.constant 0 : index
      %c0_23 = arith.constant 0 : index
      %34 = vector.load %arg5[%c0_21, %c0_22, %c0_23] : memref<1x8x128xf32, #tpu.memory_space<vmem>>, vector<1x8x128xf32>
      %35 = vector.shape_cast %34 : vector<1x8x128xf32> to vector<8x128xf32>
      %36 = vector.shape_cast %33 : vector<8x128xf32> to vector<1x8x128xf32>
      tpu.vector_store %arg5[%c0_21, %c0_22, %c0_23], %36 {strides = array<i32>} : memref<1x8x128xf32, #tpu.memory_space<vmem>>, vector<1x8x128xf32>,
      %cst_24 = arith.constant 0.000000e+00 : f32
      %37 = vector.broadcast %cst_24 : f32 to vector<8x128xf32>
      %c0_25 = arith.constant 0 : index
      %c0_26 = arith.constant 0 : index
      %c0_27 = arith.constant 0 : index
      %38 = vector.load %arg6[%c0_25, %c0_26, %c0_27] : memref<1x8x128xf32, #tpu.memory_space<vmem>>, vector<1x8x128xf32>
      %39 = vector.shape_cast %38 : vector<1x8x128xf32> to vector<8x128xf32>
      %40 = vector.shape_cast %37 : vector<8x128xf32> to vector<1x8x128xf32>
      tpu.vector_store %arg6[%c0_25, %c0_26, %c0_27], %40 {strides = array<i32>} : memref<1x8x128xf32, #tpu.memory_space<vmem>>, vector<1x8x128xf32>,
    } else {
    }
    %cst = arith.constant 0.000000e+00 : f32
    %3 = vector.broadcast %cst : f32 to vector<8x128xf32>
    %cst_1 = arith.constant 0.000000e+00 : f32
    %4 = vector.broadcast %cst_1 : f32 to vector<8x128xf32>
    %c0 = arith.constant 0 : index
    %c0_2 = arith.constant 0 : index
    %5 = vector.load %arg3[%c0, %c0_2] : memref<8x256xf32, #tpu.memory_space<vmem>>, vector<8x128xf32>
    %c0_3 = arith.constant 0 : index
    %c0_4 = arith.constant 0 : index
    %6 = vector.load %arg4[%c0_3, %c0_4] : memref<8x256xf32, #tpu.memory_space<vmem>>, vector<8x128xf32>
    %7 = arith.mulf %5, %6 : vector<8x128xf32>
    %8 = arith.addf %3, %7 : vector<8x128xf32>
    %9 = arith.mulf %5, %5 : vector<8x128xf32>
    %10 = arith.mulf %6, %6 : vector<8x128xf32>
    %11 = arith.addf %9, %10 : vector<8x128xf32>
    %12 = arith.addf %4, %11 : vector<8x128xf32>
    %c0_5 = arith.constant 0 : index
    %c128 = arith.constant 128 : index
    %13 = vector.load %arg3[%c0_5, %c128] : memref<8x256xf32, #tpu.memory_space<vmem>>, vector<8x128xf32>
    %c0_6 = arith.constant 0 : index
    %c128_7 = arith.constant 128 : index
    %14 = vector.load %arg4[%c0_6, %c128_7] : memref<8x256xf32, #tpu.memory_space<vmem>>, vector<8x128xf32>
    %15 = arith.mulf %13, %14 : vector<8x128xf32>
    %16 = arith.addf %8, %15 : vector<8x128xf32>
    %17 = arith.mulf %13, %13 : vector<8x128xf32>
    %18 = arith.mulf %14, %14 : vector<8x128xf32>
    %19 = arith.addf %17, %18 : vector<8x128xf32>
    %20 = arith.addf %12, %19 : vector<8x128xf32>
    %c0_8 = arith.constant 0 : index
    %c0_9 = arith.constant 0 : index
    %c0_10 = arith.constant 0 : index
    %21 = vector.load %arg5[%c0_8, %c0_9, %c0_10] : memref<1x8x128xf32, #tpu.memory_space<vmem>>, vector<1x8x128xf32>
    %22 = vector.shape_cast %21 : vector<1x8x128xf32> to vector<8x128xf32>
    %23 = arith.addf %22, %16 : vector<8x128xf32>
    %c0_11 = arith.constant 0 : index
    %c0_12 = arith.constant 0 : index
    %c0_13 = arith.constant 0 : index
    %24 = vector.load %arg5[%c0_11, %c0_12, %c0_13] : memref<1x8x128xf32, #tpu.memory_space<vmem>>, vector<1x8x128xf32>
    %25 = vector.shape_cast %24 : vector<1x8x128xf32> to vector<8x128xf32>
    %26 = vector.shape_cast %23 : vector<8x128xf32> to vector<1x8x128xf32>
    tpu.vector_store %arg5[%c0_11, %c0_12, %c0_13], %26 {strides = array<i32>} : memref<1x8x128xf32, #tpu.memory_space<vmem>>, vector<1x8x128xf32>,
    %c0_14 = arith.constant 0 : index
    %c0_15 = arith.constant 0 : index
    %c0_16 = arith.constant 0 : index
    %27 = vector.load %arg6[%c0_14, %c0_15, %c0_16] : memref<1x8x128xf32, #tpu.memory_space<vmem>>, vector<1x8x128xf32>
    %28 = vector.shape_cast %27 : vector<1x8x128xf32> to vector<8x128xf32>
    %29 = arith.addf %28, %20 : vector<8x128xf32>
    %c0_17 = arith.constant 0 : index
    %c0_18 = arith.constant 0 : index
    %c0_19 = arith.constant 0 : index
    %30 = vector.load %arg6[%c0_17, %c0_18, %c0_19] : memref<1x8x128xf32, #tpu.memory_space<vmem>>, vector<1x8x128xf32>
    %31 = vector.shape_cast %30 : vector<1x8x128xf32> to vector<8x128xf32>
    %32 = vector.shape_cast %29 : vector<8x128xf32> to vector<1x8x128xf32>
    tpu.vector_store %arg6[%c0_17, %c0_18, %c0_19], %32 {strides = array<i32>} : memref<1x8x128xf32, #tpu.memory_space<vmem>>, vector<1x8x128xf32>,
    return
  }
  func.func @transform_0(%arg0: i32, %arg1: i32, %arg2: i32) -> (i32, i32) {
    %c1_i32 = arith.constant 1 : i32
    %0 = arith.muli %arg1, %c1_i32 : i32
    %1 = arith.addi %0, %arg2 : i32
    %c0_i32 = arith.constant 0 : i32
    return %arg0, %1 : i32, i32
  }
  func.func @transform_1(%arg0: i32, %arg1: i32, %arg2: i32) -> (i32, i32) {
    %c1_i32 = arith.constant 1 : i32
    %0 = arith.muli %arg1, %c1_i32 : i32
    %1 = arith.addi %0, %arg2 : i32
    %c0_i32 = arith.constant 0 : i32
    return %arg0, %1 : i32, i32
  }
  func.func @transform_2(%arg0: i32, %arg1: i32, %arg2: i32) -> (i32, i32, i32) {
    %c0_i32 = arith.constant 0 : i32
    %c0_i32_0 = arith.constant 0 : i32
    return %arg1, %arg0, %c0_i32 : i32, i32, i32
  }
  func.func @transform_3(%arg0: i32, %arg1: i32, %arg2: i32) -> (i32, i32, i32) {
    %c0_i32 = arith.constant 0 : i32
    %c0_i32_0 = arith.constant 0 : i32
    return %arg1, %arg0, %c0_i32 : i32, i32, i32
  }
}

</mosaic_0001>

<bundles_post_ra>
// kernel: tpu_custom_call.1
= control target key start
LH: loop header
LB: loop body
LE: loop exit
PB: predicated region body
PF: predicated region fallthrough
CT: control target
= control target key end

     0   :  { %9 = vsyncpa [#allocation3], 0  ;;  %s262_s0 = inlined_call_operand.hbm [shape: f32[8,256], index: 0, kind: input, shape index: {}]   ;;  %s263_s1 = inlined_call_operand.hbm [shape: f32[8,256], index: 1, kind: input, shape index: {}]   ;;  %s264_s2 = inlined_call_operand.hbm [shape: f32[1,8,128], index: 2, kind: output, shape index: {0}]   ;;  %s265_s3 = inlined_call_operand.hbm [shape: f32[1,8,128], index: 3, kind: output, shape index: {1}]  }
   0x1   :  { %10 = vsyncpa [#allocation6], 0 }
   0x2   :  { %11 = vsyncpa [#allocation4], 0 }
   0x3   :  { %12 = vsyncpa [#allocation9], 0  ;;  %s22_s14 = sshll.u32 %s262_s0, 4  ;;  %s226_s15 = smov [#allocation2]   ;;  %s23_s14 = int_to_ptr.hbm [resolvable:$true] %s22_s14 }
   0x4   :  { %s24_s16 = sshll.u32 %s226_s15, 4  ;;  %s37_s19 = sshll.u32 %s263_s1, 4  ;;  %s25_s16 = int_to_ptr.vmem [resolvable:$true] %s24_s16  ;;  %s38_s19 = int_to_ptr.hbm [resolvable:$true] %s37_s19 }
   0x5   :  { %27 = dma.hbm_to_vmem [thread:$0]  %s23_s14, 256, %s25_s16, [#allocation3]  }
   0x6   :  { %s227_s20 = smov [#allocation5]  }
   0x7   :  { %s39_s21 = sshll.u32 %s227_s20, 4  ;;  %s40_s21 = int_to_ptr.vmem [resolvable:$true] %s39_s21 }
   0x8   :  { %42 = dma.hbm_to_vmem [thread:$0]  %s38_s19, 256, %s40_s21, [#allocation6]  }
   0x9   :  { %218 = dma.done.wait [#allocation3], 256  }
   0xa   :  { %219 = vsyncadd [#allocation3], 4294967040 }
   0xb   :  { %220 = dma.done.wait [#allocation6], 256  }
   0xc   :  { %221 = vsyncadd [#allocation6], 4294967040  ;;  %v61_v0 = vld [vmem:[#allocation2] sm:$0xff]  ;;  %v62_v1 = vld [vmem:[#allocation5] sm:$0xff]  ;;  %s228_s0 = smov [#allocation7]   ;;  %s90_s24 = sshll.u32 %s264_s2, 4  ;;  %s91_s24 = int_to_ptr.hbm [resolvable:$true] %s90_s24 }
   0xd   :  { %v69_v2 = vld [vmem:[#allocation2 + $0x8] sm:$0xff]  ;;  %v63_v3 = vmul.f32 %v62_v1, %v61_v0  ;;  %v70_v4 = vld [vmem:[#allocation5 + $0x8] sm:$0xff]  ;;  %v65_v5 = vmul.f32 %v61_v0, %v61_v0  ;;  %v66_v6 = vmul.f32 %v62_v1, %v62_v1  ;;  %s88_s1 = sshll.u32 %s228_s0, 4  ;;  %s229_s25 = smov [#allocation8]   ;;  %s89_s1 = int_to_ptr.vmem [resolvable:$true] %s88_s1 }
   0xe   :  { %v73_v7 = vmul.f32 %v69_v2, %v69_v2  ;;  %v71_v8 = vmul.f32 %v70_v4, %v69_v2  ;;  %v74_v9 = vmul.f32 %v70_v4, %v70_v4  ;;  %s99_s26 = sshll.u32 %s229_s25, 4  ;;  %s101_s29 = sshll.u32 %s265_s3, 4  ;;  %s100_s26 = int_to_ptr.vmem [resolvable:$true] %s99_s26  ;;  %s102_s29 = int_to_ptr.hbm [resolvable:$true] %s101_s29 }
   0xf   :  { %v67_v10 = vadd.f32 %v66_v6, %v65_v5 }
  0x10   :  { %v72_v11 = vadd.f32 %v71_v8, %v63_v3  ;;  %v75_v12 = vadd.f32 %v74_v9, %v73_v7 }
  0x12   :  { %v76_v13 = vadd.f32 %v75_v12, %v67_v10  ;;  %79 = vst [vmem:[#allocation7] sm:$0xff] %v72_v11 }
  0x13   :  { %93 = dma.vmem_to_hbm [thread:$0]  %s89_s1, 128, %s91_s24, [#allocation4]  }
  0x14   :  { %82 = vst [vmem:[#allocation8] sm:$0xff] %v76_v13 }
  0x15   :  { %104 = dma.vmem_to_hbm [thread:$0]  %s100_s26, 128, %s102_s29, [#allocation9]  }
  0x16   :  { %222 = dma.done.wait [#allocation4], 128  }
  0x17   :  { %223 = vsyncadd [#allocation4], 4294967168 }
  0x18   :  { %224 = dma.done.wait [#allocation9], 128  }
  0x19   :  { %225 = vsyncadd [#allocation9], 4294967168 }
  0x1a   :  { %113 = vsyncpa [#allocation3], 1 }
  0x1b   :  { %114 = vsyncpa [#allocation6], 1 }
  0x1c   :  { %115 = vsyncpa [#allocation4], 1 }
  0x1d   :  { %116 = vsyncpa [#allocation9], 1 }

</bundles_post_ra>
